<compile_context>
chip_gen: v6e
topology: v6e:2x2x1
jax: 0.10.0
libtpu: 0.0.40
codegen_flags: <defaults>
</compile_context>

<pallas_src>
import functools

import jax
import jax.numpy as jnp
import numpy as np
from jax import lax
from jax.experimental import pallas as pl
from jax.experimental.pallas import tpu as pltpu

_NEG = -1e30  # finite "-inf" used to lane-pad the fc2 logits


def _bilstm_classifier_kernel(x_ref, w_ref, b_ref, out_ref, *, B, T, E, H2, OP):
    """Fused batched BiLSTM + fc1/ReLU/fc2/log_softmax.

    x_ref : (T*B, E)  bf16, time-major (row = t*B + b).
    w_ref : packed bf16 weights, LANES-wide:
              rows [0,  E)       [wih_f | wih_b]              cols [0, 8E)
              rows [E,  3E)      [[whh_f],[whh_b]] K-stacked  cols [0, 4E)
              rows [3E, 5E)      fc1_w (2E, 2H)               cols [0, 2H)
              rows [5E, 5E+2H)   fc2_w (2H, OP) zero-padded   cols [0, OP)
    b_ref : (8, LANES) f32: row0 = b_ih+b_hh both dirs (8E), row1 = fc1_b (2H),
            row2 = fc2_b with -1e30 on lanes [O, OP).
    out_ref: (B, OP) f32 log-probabilities (lanes >= O ~ -1e30, sliced by wrapper).
    """
    G = 4 * E
    R1 = E
    R2 = R1 + 2 * E
    R3 = R2 + 2 * E
    R4 = R3 + H2

    wih_all = w_ref[0:R1, 0:2 * G]       # (E, 8E)  bf16
    whh_stk = w_ref[R1:R2, 0:G]          # (2E, 4E) bf16
    fc1_w = w_ref[R2:R3, 0:H2]           # (2E, 2H) bf16
    fc2_w = w_ref[R3:R4, 0:OP]           # (2H, OP) bf16

    b_all = b_ref[0:1, 0:2 * G]          # (1, 8E) f32
    fc1_b = b_ref[1:2, 0:H2]             # (1, 2H) f32
    fc2_b = b_ref[2:3, 0:OP]             # (1, OP) f32

    # ---- Hoisted input projection: ONE bf16 matmul for all timesteps / directions /
    # batch rows, off the serial recurrence; f32 accumulation + bias.
    pre_all = (jnp.dot(x_ref[...], wih_all, preferred_element_type=jnp.float32)
               + b_all)                                            # (T*B, 8E) f32

    # Per-step pre-activations stacked [fwd @ t=i ; bwd @ t=T-1-i] on sublanes.
    # Static slices/concats depending only on pre_all -> off the serial h/c chain.
    pre_steps = []
    for i in range(T):
        pf = pre_all[i * B:(i + 1) * B, 0:G]                       # (B, 4E) fwd @ t=i
        pb = pre_all[(T - 1 - i) * B:(T - i) * B, G:2 * G]         # (B, 4E) bwd @ t=T-1-i
        pre_steps.append(jnp.concatenate([pf, pb], axis=0))        # (2B, 4E)

    # ---- Fused bidirectional recurrence.
    # Carry hp is lane-padded: rows [0,B) = [h_fwd | 0], rows [B,2B) = [0 | h_bwd].
    # One (2B,2E)@(2E,4E) dot per step produces exactly the valid gates for BOTH
    # directions: no wasted MXU columns, no sublane merge on the critical path.
    row_is_fwd = lax.broadcasted_iota(jnp.int32, (2 * B, 2 * E), 0) < B
    hp = jnp.zeros((2 * B, 2 * E), jnp.float32)
    c = jnp.zeros((2 * B, E), jnp.float32)
    z_be = jnp.zeros((2 * B, E), jnp.float32)

    # T is small & static: plain Python loop -> fully static indices for the scheduler.
    for i in range(T):
        hh = jnp.dot(hp.astype(jnp.bfloat16), whh_stk,
                     preferred_element_type=jnp.float32)           # (2B, 4E) f32
        gates = pre_steps[i] + hh                                  # (2B, 4E) f32
        # One sigmoid + one tanh EUP push cover all 8 gate blocks of both directions.
        sig = jax.nn.sigmoid(gates)
        tnh = jnp.tanh(gates)
        i_g = sig[:, 0 * E:1 * E]
        f_g = sig[:, 1 * E:2 * E]
        g_g = tnh[:, 2 * E:3 * E]
        o_g = sig[:, 3 * E:4 * E]
        c = f_g * c + i_g * g_g
        h = o_g * jnp.tanh(c)                                      # (2B, E) f32
        # Repad h into the (2B, 2E) carry layout (fwd rows -> left half, bwd -> right).
        hp = jnp.where(row_is_fwd,
                       jnp.concatenate([h, z_be], axis=1),
                       jnp.concatenate([z_be, h], axis=1))

    # forward_out = fwd hidden at t=T-1 (rows [0,B)); back_out = bwd hidden at t=0
    # (rows [B,2B)). hp already holds them in disjoint lane halves, so the
    # [forward_out | back_out] concat is just an add of the two row blocks.
    hidden_cat = hp[0:B, :] + hp[B:2 * B, :]                       # (B, 2E)

    dense = (jnp.dot(hidden_cat.astype(jnp.bfloat16), fc1_w,
                     preferred_element_type=jnp.float32) + fc1_b)  # (B, 2H)
    relu_vec = jnp.maximum(dense, 0.0)
    logits = (jnp.dot(relu_vec.astype(jnp.bfloat16), fc2_w,
                      preferred_element_type=jnp.float32) + fc2_b)  # (B, OP)

    # log_softmax over lanes; padded lanes hold ~-1e30 -> exp() == 0, max unaffected.
    m = jnp.max(logits, axis=-1, keepdims=True)
    zl = logits - m
    lse = jnp.log(jnp.sum(jnp.exp(zl), axis=-1, keepdims=True))
    out_ref[...] = zl - lse


def bilstm_classifier_forward(embedds, params):
    """embedds: (B, T, E) f32; each batch row == one BiLSTMclassfier.forward() call.

    Returns (B, output_dim) f32 log-probabilities.
    """
    B, T, E = embedds.shape
    G = 4 * E
    H2 = params["fc1_b"].shape[-1]              # 2 * hidden_dim
    O = params["fc2_b"].shape[-1]               # output_dim
    OP = ((O + 127) // 128) * 128               # lane-pad logits -> dense store/reduce
    LANES = max(2 * G, OP, H2, 128)

    def pad_cols(a, lanes):
        return jnp.pad(a, ((0, 0), (0, lanes - a.shape[1])))

    # ---- One-time packing (plain XLA ops): 8 tiny operands -> 2 contiguous DMAs.
    wih_all = jnp.concatenate([params["wih_f"], params["wih_b"]], axis=1)    # (E, 8E)
    whh_stk = jnp.concatenate([params["whh_f"], params["whh_b"]], axis=0)    # (2E, 4E)
    w_packed = jnp.concatenate([
        pad_cols(wih_all, LANES),
        pad_cols(whh_stk, LANES),
        pad_cols(params["fc1_w"], LANES),
        pad_cols(params["fc2_w"], LANES),
    ], axis=0).astype(jnp.bfloat16)                                          # (5E+2H, LANES)

    b_all = jnp.concatenate([params["b_f"], params["b_b"]], axis=1)          # (1, 8E)
    fc2_bp = jnp.full((1, OP), _NEG, jnp.float32).at[:, :O].set(params["fc2_b"])
    b_packed = jnp.concatenate([
        pad_cols(b_all, LANES),
        pad_cols(params["fc1_b"], LANES),
        pad_cols(fc2_bp, LANES),
        jnp.zeros((5, LANES), jnp.float32),      # sublane pad to 8 rows
    ], axis=0)                                                               # (8, LANES)

    # Time-major, batch-stacked input: row t*B + b, for one big input-projection dot.
    x_tb = jnp.transpose(embedds, (1, 0, 2)).reshape(T * B, E).astype(jnp.bfloat16)

    kernel = functools.partial(_bilstm_classifier_kernel,
                               B=B, T=T, E=E, H2=H2, OP=OP)
    out_pad = pl.pallas_call(
        kernel,
        out_shape=jax.ShapeDtypeStruct((B, OP), jnp.float32),
        in_specs=[pl.BlockSpec(memory_space=pltpu.MemorySpace.VMEM)] * 3,
        out_specs=pl.BlockSpec(memory_space=pltpu.MemorySpace.VMEM),
    )(x_tb, w_packed, b_packed)
    return out_pad[:, :O]


def init_params(key, embedding_dim, hidden_dim, output_dim):
    """Deterministic synthetic params in PyTorch layouts, rearranged for the kernel."""
    E, H, O = embedding_dim, hidden_dim, output_dim
    ks = jax.random.split(key, 12)
    k_lstm = 1.0 / np.sqrt(E)        # LSTM hidden size == E per module construction
    k_fc1 = 1.0 / np.sqrt(2 * E)
    k_fc2 = 1.0 / np.sqrt(2 * H)

    def u(k, shape, bound):
        return jax.random.uniform(k, shape, jnp.float32, -bound, bound)

    # PyTorch LSTM layouts: weight_ih (4E, E), weight_hh (4E, E), biases (4E,), gates [i,f,g,o]
    w_ih_f = u(ks[0], (4 * E, E), k_lstm)
    w_hh_f = u(ks[1], (4 * E, E), k_lstm)
    b_ih_f = u(ks[2], (4 * E,), k_lstm)
    b_hh_f = u(ks[3], (4 * E,), k_lstm)
    w_ih_b = u(ks[4], (4 * E, E), k_lstm)
    w_hh_b = u(ks[5], (4 * E, E), k_lstm)
    b_ih_b = u(ks[6], (4 * E,), k_lstm)
    b_hh_b = u(ks[7], (4 * E,), k_lstm)
    # fc1: (2H, 2E) weight, (2H,) bias ;  fc2: (O, 2H) weight, (O,) bias
    fc1_w = u(ks[8], (2 * H, 2 * E), k_fc1)
    fc1_b = u(ks[9], (2 * H,), k_fc1)
    fc2_w = u(ks[10], (O, 2 * H), k_fc2)
    fc2_b = u(ks[11], (O,), k_fc2)

    return {
        "wih_f": w_ih_f.T, "whh_f": w_hh_f.T, "b_f": (b_ih_f + b_hh_f)[None, :],
        "wih_b": w_ih_b.T, "whh_b": w_hh_b.T, "b_b": (b_ih_b + b_hh_b)[None, :],
        "fc1_w": fc1_w.T, "fc1_b": fc1_b[None, :],
        "fc2_w": fc2_w.T, "fc2_b": fc2_b[None, :],
    }


def reference_forward(embedds_batch, params):
    """Pure-JAX f32 reference mirroring the PyTorch forward, one call per batch row."""
    def one(embedds):
        T, E = embedds.shape

        def run(wih, whh, b, reverse):
            h = jnp.zeros((1, E), jnp.float32)
            c = jnp.zeros((1, E), jnp.float32)
            ts = range(T - 1, -1, -1) if reverse else range(T)
            for t in ts:
                g = embedds[t:t + 1] @ wih + h @ whh + b
                i_g = jax.nn.sigmoid(g[:, 0 * E:1 * E])
                f_g = jax.nn.sigmoid(g[:, 1 * E:2 * E])
                g_g = jnp.tanh(g[:, 2 * E:3 * E])
                o_g = jax.nn.sigmoid(g[:, 3 * E:4 * E])
                c = f_g * c + i_g * g_g
                h = o_g * jnp.tanh(c)
            return h

        h_fwd = run(params["wih_f"], params["whh_f"], params["b_f"], False)
        h_bwd = run(params["wih_b"], params["whh_b"], params["b_b"], True)
        hidden = jnp.concatenate([h_fwd, h_bwd], axis=1)
        dense = hidden @ params["fc1_w"] + params["fc1_b"]
        relu = jnp.maximum(dense, 0.0)
        logits = relu @ params["fc2_w"] + params["fc2_b"]
        return jax.nn.log_softmax(logits, axis=1)[0]

    return jnp.stack([one(embedds_batch[b]) for b in range(embedds_batch.shape[0])])


if __name__ == "__main__":
    # Small shapes consistent with the module: batch=4 sequences, seq=8,
    # embedding_dim=32, hidden_dim=32, output_dim=8, n_layers=1 (dropout inactive).
    B, T, E, H, O = 4, 8, 32, 32, 8
    key = jax.random.PRNGKey(0)
    k_x, k_p = jax.random.split(key)
    embedds = jax.random.normal(k_x, (B, T, E), jnp.float32)
    params = init_params(k_p, E, H, O)

    out = bilstm_classifier_forward(embedds, params)
    out = jax.block_until_ready(out)

    ref = reference_forward(embedds, params)
    # bf16 MXU operands (f32 accumulation / elementwise) -> relaxed tolerance.
    np.testing.assert_allclose(np.asarray(out), np.asarray(ref), atol=5e-2, rtol=5e-2)

    print("KERNEL_OK")
</pallas_src>

<mosaic_0001>
module attributes {stable_mosaic.version = 11 : i64} {
  func.func @_bilstm_classifier_kernel(%arg0: memref<32x32xbf16, #tpu.memory_space<vmem>>, %arg1: memref<224x256xbf16, #tpu.memory_space<vmem>>, %arg2: memref<8x256xf32, #tpu.memory_space<vmem>>, %arg3: memref<4x128xf32, #tpu.memory_space<vmem>>) attributes {dimension_semantics = [], scalar_prefetch = 0 : i64, scratch_operands = 0 : i64, tpu.core_type = #tpu.core_type<tc>} {
    %c0 = arith.constant 0 : index
    %c0_0 = arith.constant 0 : index
    %0 = vector.load %arg1[%c0, %c0_0] : memref<224x256xbf16, #tpu.memory_space<vmem>>, vector<32x256xbf16>
    %c32 = arith.constant 32 : index
    %c0_1 = arith.constant 0 : index
    %1 = vector.load %arg1[%c32, %c0_1] : memref<224x256xbf16, #tpu.memory_space<vmem>>, vector<64x128xbf16>
    %c96 = arith.constant 96 : index
    %c0_2 = arith.constant 0 : index
    %2 = vector.load %arg1[%c96, %c0_2] : memref<224x256xbf16, #tpu.memory_space<vmem>>, vector<64x64xbf16>
    %c160 = arith.constant 160 : index
    %c0_3 = arith.constant 0 : index
    %3 = vector.load %arg1[%c160, %c0_3] : memref<224x256xbf16, #tpu.memory_space<vmem>>, vector<64x128xbf16>
    %c0_4 = arith.constant 0 : index
    %c0_5 = arith.constant 0 : index
    %4 = vector.load %arg2[%c0_4, %c0_5] : memref<8x256xf32, #tpu.memory_space<vmem>>, vector<1x256xf32>
    %c1 = arith.constant 1 : index
    %c0_6 = arith.constant 0 : index
    %5 = vector.load %arg2[%c1, %c0_6] : memref<8x256xf32, #tpu.memory_space<vmem>>, vector<1x64xf32>
    %c2 = arith.constant 2 : index
    %c0_7 = arith.constant 0 : index
    %6 = vector.load %arg2[%c2, %c0_7] : memref<8x256xf32, #tpu.memory_space<vmem>>, vector<1x128xf32>
    %c0_8 = arith.constant 0 : index
    %c0_9 = arith.constant 0 : index
    %7 = vector.load %arg0[%c0_8, %c0_9] : memref<32x32xbf16, #tpu.memory_space<vmem>>, vector<32x32xbf16>
    %cst = arith.constant dense<0.000000e+00> : vector<32x256xf32>
    %8 = tpu.matmul %7, %0, %cst {dimension_numbers = #tpu.dot_dimension_numbers<[1], [0], [0], [1], [0, 0, 1, 1], [], []>} : vector<32x32xbf16>, vector<32x256xbf16>, vector<32x256xf32> -> vector<32x256xf32>
    %9 = vector.broadcast %4 : vector<1x256xf32> to vector<32x256xf32>
    %10 = arith.addf %8, %9 : vector<32x256xf32>
    %11 = vector.extract_strided_slice %10 {offsets = [0, 0], sizes = [4, 128], strides = [1, 1]} : vector<32x256xf32> to vector<4x128xf32>
    %12 = vector.extract_strided_slice %10 {offsets = [28, 128], sizes = [4, 128], strides = [1, 1]} : vector<32x256xf32> to vector<4x128xf32>
    %13 = tpu.concatenate %11, %12 in 0 : vector<4x128xf32>, vector<4x128xf32> -> vector<8x128xf32>
    %14 = vector.extract_strided_slice %10 {offsets = [4, 0], sizes = [4, 128], strides = [1, 1]} : vector<32x256xf32> to vector<4x128xf32>
    %15 = vector.extract_strided_slice %10 {offsets = [24, 128], sizes = [4, 128], strides = [1, 1]} : vector<32x256xf32> to vector<4x128xf32>
    %16 = tpu.concatenate %14, %15 in 0 : vector<4x128xf32>, vector<4x128xf32> -> vector<8x128xf32>
    %17 = vector.extract_strided_slice %10 {offsets = [8, 0], sizes = [4, 128], strides = [1, 1]} : vector<32x256xf32> to vector<4x128xf32>
    %18 = vector.extract_strided_slice %10 {offsets = [20, 128], sizes = [4, 128], strides = [1, 1]} : vector<32x256xf32> to vector<4x128xf32>
    %19 = tpu.concatenate %17, %18 in 0 : vector<4x128xf32>, vector<4x128xf32> -> vector<8x128xf32>
    %20 = vector.extract_strided_slice %10 {offsets = [12, 0], sizes = [4, 128], strides = [1, 1]} : vector<32x256xf32> to vector<4x128xf32>
    %21 = vector.extract_strided_slice %10 {offsets = [16, 128], sizes = [4, 128], strides = [1, 1]} : vector<32x256xf32> to vector<4x128xf32>
    %22 = tpu.concatenate %20, %21 in 0 : vector<4x128xf32>, vector<4x128xf32> -> vector<8x128xf32>
    %23 = vector.extract_strided_slice %10 {offsets = [16, 0], sizes = [4, 128], strides = [1, 1]} : vector<32x256xf32> to vector<4x128xf32>
    %24 = vector.extract_strided_slice %10 {offsets = [12, 128], sizes = [4, 128], strides = [1, 1]} : vector<32x256xf32> to vector<4x128xf32>
    %25 = tpu.concatenate %23, %24 in 0 : vector<4x128xf32>, vector<4x128xf32> -> vector<8x128xf32>
    %26 = vector.extract_strided_slice %10 {offsets = [20, 0], sizes = [4, 128], strides = [1, 1]} : vector<32x256xf32> to vector<4x128xf32>
    %27 = vector.extract_strided_slice %10 {offsets = [8, 128], sizes = [4, 128], strides = [1, 1]} : vector<32x256xf32> to vector<4x128xf32>
    %28 = tpu.concatenate %26, %27 in 0 : vector<4x128xf32>, vector<4x128xf32> -> vector<8x128xf32>
    %29 = vector.extract_strided_slice %10 {offsets = [24, 0], sizes = [4, 128], strides = [1, 1]} : vector<32x256xf32> to vector<4x128xf32>
    %30 = vector.extract_strided_slice %10 {offsets = [4, 128], sizes = [4, 128], strides = [1, 1]} : vector<32x256xf32> to vector<4x128xf32>
    %31 = tpu.concatenate %29, %30 in 0 : vector<4x128xf32>, vector<4x128xf32> -> vector<8x128xf32>
    %32 = vector.extract_strided_slice %10 {offsets = [28, 0], sizes = [4, 128], strides = [1, 1]} : vector<32x256xf32> to vector<4x128xf32>
    %33 = vector.extract_strided_slice %10 {offsets = [0, 128], sizes = [4, 128], strides = [1, 1]} : vector<32x256xf32> to vector<4x128xf32>
    %34 = tpu.concatenate %32, %33 in 0 : vector<4x128xf32>, vector<4x128xf32> -> vector<8x128xf32>
    %35 = tpu.iota {dimensions = array<i32: 0>} : vector<8x64xi32>
    %c4_i32 = arith.constant 4 : i32
    %36 = vector.broadcast %c4_i32 : i32 to vector<8x64xi32>
    %37 = arith.cmpi slt, %35, %36 : vector<8x64xi32>
    %cst_10 = arith.constant 0.000000e+00 : f32
    %38 = vector.broadcast %cst_10 : f32 to vector<8x64xf32>
    %cst_11 = arith.constant 0.000000e+00 : f32
    %39 = vector.broadcast %cst_11 : f32 to vector<8x32xf32>
    %cst_12 = arith.constant 0.000000e+00 : f32
    %40 = vector.broadcast %cst_12 : f32 to vector<8x32xf32>
    %41 = arith.truncf %38 : vector<8x64xf32> to vector<8x64xbf16>
    %cst_13 = arith.constant dense<0.000000e+00> : vector<8x128xf32>
    %42 = tpu.matmul %41, %1, %cst_13 {dimension_numbers = #tpu.dot_dimension_numbers<[1], [0], [0], [1], [0, 0, 1, 1], [], []>} : vector<8x64xbf16>, vector<64x128xbf16>, vector<8x128xf32> -> vector<8x128xf32>
    %43 = arith.addf %13, %42 : vector<8x128xf32>
    %44 = arith.negf %43 : vector<8x128xf32>
    %45 = math.exp %44 : vector<8x128xf32>
    %cst_14 = arith.constant 1.000000e+00 : f32
    %46 = vector.broadcast %cst_14 : f32 to vector<8x128xf32>
    %47 = arith.addf %46, %45 : vector<8x128xf32>
    %48 = arith.divf %46, %47 : vector<8x128xf32>
    %49 = math.tanh %43 : vector<8x128xf32>
    %50 = vector.extract_strided_slice %48 {offsets = [0, 0], sizes = [8, 32], strides = [1, 1]} : vector<8x128xf32> to vector<8x32xf32>
    %51 = vector.extract_strided_slice %48 {offsets = [0, 32], sizes = [8, 32], strides = [1, 1]} : vector<8x128xf32> to vector<8x32xf32>
    %52 = vector.extract_strided_slice %49 {offsets = [0, 64], sizes = [8, 32], strides = [1, 1]} : vector<8x128xf32> to vector<8x32xf32>
    %53 = vector.extract_strided_slice %48 {offsets = [0, 96], sizes = [8, 32], strides = [1, 1]} : vector<8x128xf32> to vector<8x32xf32>
    %54 = arith.mulf %51, %39 : vector<8x32xf32>
    %55 = arith.mulf %50, %52 : vector<8x32xf32>
    %56 = arith.addf %54, %55 : vector<8x32xf32>
    %57 = math.tanh %56 : vector<8x32xf32>
    %58 = arith.mulf %53, %57 : vector<8x32xf32>
    %59 = tpu.concatenate %58, %40 in 1 : vector<8x32xf32>, vector<8x32xf32> -> vector<8x64xf32>
    %60 = tpu.concatenate %40, %58 in 1 : vector<8x32xf32>, vector<8x32xf32> -> vector<8x64xf32>
    %61 = arith.select %37, %59, %60 : vector<8x64xi1>, vector<8x64xf32>
    %62 = arith.truncf %61 : vector<8x64xf32> to vector<8x64xbf16>
    %cst_15 = arith.constant dense<0.000000e+00> : vector<8x128xf32>
    %63 = tpu.matmul %62, %1, %cst_15 {dimension_numbers = #tpu.dot_dimension_numbers<[1], [0], [0], [1], [0, 0, 1, 1], [], []>} : vector<8x64xbf16>, vector<64x128xbf16>, vector<8x128xf32> -> vector<8x128xf32>
    %64 = arith.addf %16, %63 : vector<8x128xf32>
    %65 = arith.negf %64 : vector<8x128xf32>
    %66 = math.exp %65 : vector<8x128xf32>
    %cst_16 = arith.constant 1.000000e+00 : f32
    %67 = vector.broadcast %cst_16 : f32 to vector<8x128xf32>
    %68 = arith.addf %67, %66 : vector<8x128xf32>
    %69 = arith.divf %67, %68 : vector<8x128xf32>
    %70 = math.tanh %64 : vector<8x128xf32>
    %71 = vector.extract_strided_slice %69 {offsets = [0, 0], sizes = [8, 32], strides = [1, 1]} : vector<8x128xf32> to vector<8x32xf32>
    %72 = vector.extract_strided_slice %69 {offsets = [0, 32], sizes = [8, 32], strides = [1, 1]} : vector<8x128xf32> to vector<8x32xf32>
    %73 = vector.extract_strided_slice %70 {offsets = [0, 64], sizes = [8, 32], strides = [1, 1]} : vector<8x128xf32> to vector<8x32xf32>
    %74 = vector.extract_strided_slice %69 {offsets = [0, 96], sizes = [8, 32], strides = [1, 1]} : vector<8x128xf32> to vector<8x32xf32>
    %75 = arith.mulf %72, %56 : vector<8x32xf32>
    %76 = arith.mulf %71, %73 : vector<8x32xf32>
    %77 = arith.addf %75, %76 : vector<8x32xf32>
    %78 = math.tanh %77 : vector<8x32xf32>
    %79 = arith.mulf %74, %78 : vector<8x32xf32>
    %80 = tpu.concatenate %79, %40 in 1 : vector<8x32xf32>, vector<8x32xf32> -> vector<8x64xf32>
    %81 = tpu.concatenate %40, %79 in 1 : vector<8x32xf32>, vector<8x32xf32> -> vector<8x64xf32>
    %82 = arith.select %37, %80, %81 : vector<8x64xi1>, vector<8x64xf32>
    %83 = arith.truncf %82 : vector<8x64xf32> to vector<8x64xbf16>
    %cst_17 = arith.constant dense<0.000000e+00> : vector<8x128xf32>
    %84 = tpu.matmul %83, %1, %cst_17 {dimension_numbers = #tpu.dot_dimension_numbers<[1], [0], [0], [1], [0, 0, 1, 1], [], []>} : vector<8x64xbf16>, vector<64x128xbf16>, vector<8x128xf32> -> vector<8x128xf32>
    %85 = arith.addf %19, %84 : vector<8x128xf32>
    %86 = arith.negf %85 : vector<8x128xf32>
    %87 = math.exp %86 : vector<8x128xf32>
    %cst_18 = arith.constant 1.000000e+00 : f32
    %88 = vector.broadcast %cst_18 : f32 to vector<8x128xf32>
    %89 = arith.addf %88, %87 : vector<8x128xf32>
    %90 = arith.divf %88, %89 : vector<8x128xf32>
    %91 = math.tanh %85 : vector<8x128xf32>
    %92 = vector.extract_strided_slice %90 {offsets = [0, 0], sizes = [8, 32], strides = [1, 1]} : vector<8x128xf32> to vector<8x32xf32>
    %93 = vector.extract_strided_slice %90 {offsets = [0, 32], sizes = [8, 32], strides = [1, 1]} : vector<8x128xf32> to vector<8x32xf32>
    %94 = vector.extract_strided_slice %91 {offsets = [0, 64], sizes = [8, 32], strides = [1, 1]} : vector<8x128xf32> to vector<8x32xf32>
    %95 = vector.extract_strided_slice %90 {offsets = [0, 96], sizes = [8, 32], strides = [1, 1]} : vector<8x128xf32> to vector<8x32xf32>
    %96 = arith.mulf %93, %77 : vector<8x32xf32>
    %97 = arith.mulf %92, %94 : vector<8x32xf32>
    %98 = arith.addf %96, %97 : vector<8x32xf32>
    %99 = math.tanh %98 : vector<8x32xf32>
    %100 = arith.mulf %95, %99 : vector<8x32xf32>
    %101 = tpu.concatenate %100, %40 in 1 : vector<8x32xf32>, vector<8x32xf32> -> vector<8x64xf32>
    %102 = tpu.concatenate %40, %100 in 1 : vector<8x32xf32>, vector<8x32xf32> -> vector<8x64xf32>
    %103 = arith.select %37, %101, %102 : vector<8x64xi1>, vector<8x64xf32>
    %104 = arith.truncf %103 : vector<8x64xf32> to vector<8x64xbf16>
    %cst_19 = arith.constant dense<0.000000e+00> : vector<8x128xf32>
    %105 = tpu.matmul %104, %1, %cst_19 {dimension_numbers = #tpu.dot_dimension_numbers<[1], [0], [0], [1], [0, 0, 1, 1], [], []>} : vector<8x64xbf16>, vector<64x128xbf16>, vector<8x128xf32> -> vector<8x128xf32>
    %106 = arith.addf %22, %105 : vector<8x128xf32>
    %107 = arith.negf %106 : vector<8x128xf32>
    %108 = math.exp %107 : vector<8x128xf32>
    %cst_20 = arith.constant 1.000000e+00 : f32
    %109 = vector.broadcast %cst_20 : f32 to vector<8x128xf32>
    %110 = arith.addf %109, %108 : vector<8x128xf32>
    %111 = arith.divf %109, %110 : vector<8x128xf32>
    %112 = math.tanh %106 : vector<8x128xf32>
    %113 = vector.extract_strided_slice %111 {offsets = [0, 0], sizes = [8, 32], strides = [1, 1]} : vector<8x128xf32> to vector<8x32xf32>
    %114 = vector.extract_strided_slice %111 {offsets = [0, 32], sizes = [8, 32], strides = [1, 1]} : vector<8x128xf32> to vector<8x32xf32>
    %115 = vector.extract_strided_slice %112 {offsets = [0, 64], sizes = [8, 32], strides = [1, 1]} : vector<8x128xf32> to vector<8x32xf32>
    %116 = vector.extract_strided_slice %111 {offsets = [0, 96], sizes = [8, 32], strides = [1, 1]} : vector<8x128xf32> to vector<8x32xf32>
    %117 = arith.mulf %114, %98 : vector<8x32xf32>
    %118 = arith.mulf %113, %115 : vector<8x32xf32>
    %119 = arith.addf %117, %118 : vector<8x32xf32>
    %120 = math.tanh %119 : vector<8x32xf32>
    %121 = arith.mulf %116, %120 : vector<8x32xf32>
    %122 = tpu.concatenate %121, %40 in 1 : vector<8x32xf32>, vector<8x32xf32> -> vector<8x64xf32>
    %123 = tpu.concatenate %40, %121 in 1 : vector<8x32xf32>, vector<8x32xf32> -> vector<8x64xf32>
    %124 = arith.select %37, %122, %123 : vector<8x64xi1>, vector<8x64xf32>
    %125 = arith.truncf %124 : vector<8x64xf32> to vector<8x64xbf16>
    %cst_21 = arith.constant dense<0.000000e+00> : vector<8x128xf32>
    %126 = tpu.matmul %125, %1, %cst_21 {dimension_numbers = #tpu.dot_dimension_numbers<[1], [0], [0], [1], [0, 0, 1, 1], [], []>} : vector<8x64xbf16>, vector<64x128xbf16>, vector<8x128xf32> -> vector<8x128xf32>
    %127 = arith.addf %25, %126 : vector<8x128xf32>
    %128 = arith.negf %127 : vector<8x128xf32>
    %129 = math.exp %128 : vector<8x128xf32>
    %cst_22 = arith.constant 1.000000e+00 : f32
    %130 = vector.broadcast %cst_22 : f32 to vector<8x128xf32>
    %131 = arith.addf %130, %129 : vector<8x128xf32>
    %132 = arith.divf %130, %131 : vector<8x128xf32>
    %133 = math.tanh %127 : vector<8x128xf32>
    %134 = vector.extract_strided_slice %132 {offsets = [0, 0], sizes = [8, 32], strides = [1, 1]} : vector<8x128xf32> to vector<8x32xf32>
    %135 = vector.extract_strided_slice %132 {offsets = [0, 32], sizes = [8, 32], strides = [1, 1]} : vector<8x128xf32> to vector<8x32xf32>
    %136 = vector.extract_strided_slice %133 {offsets = [0, 64], sizes = [8, 32], strides = [1, 1]} : vector<8x128xf32> to vector<8x32xf32>
    %137 = vector.extract_strided_slice %132 {offsets = [0, 96], sizes = [8, 32], strides = [1, 1]} : vector<8x128xf32> to vector<8x32xf32>
    %138 = arith.mulf %135, %119 : vector<8x32xf32>
    %139 = arith.mulf %134, %136 : vector<8x32xf32>
    %140 = arith.addf %138, %139 : vector<8x32xf32>
    %141 = math.tanh %140 : vector<8x32xf32>
    %142 = arith.mulf %137, %141 : vector<8x32xf32>
    %143 = tpu.concatenate %142, %40 in 1 : vector<8x32xf32>, vector<8x32xf32> -> vector<8x64xf32>
    %144 = tpu.concatenate %40, %142 in 1 : vector<8x32xf32>, vector<8x32xf32> -> vector<8x64xf32>
    %145 = arith.select %37, %143, %144 : vector<8x64xi1>, vector<8x64xf32>
    %146 = arith.truncf %145 : vector<8x64xf32> to vector<8x64xbf16>
    %cst_23 = arith.constant dense<0.000000e+00> : vector<8x128xf32>
    %147 = tpu.matmul %146, %1, %cst_23 {dimension_numbers = #tpu.dot_dimension_numbers<[1], [0], [0], [1], [0, 0, 1, 1], [], []>} : vector<8x64xbf16>, vector<64x128xbf16>, vector<8x128xf32> -> vector<8x128xf32>
    %148 = arith.addf %28, %147 : vector<8x128xf32>
    %149 = arith.negf %148 : vector<8x128xf32>
    %150 = math.exp %149 : vector<8x128xf32>
    %cst_24 = arith.constant 1.000000e+00 : f32
    %151 = vector.broadcast %cst_24 : f32 to vector<8x128xf32>
    %152 = arith.addf %151, %150 : vector<8x128xf32>
    %153 = arith.divf %151, %152 : vector<8x128xf32>
    %154 = math.tanh %148 : vector<8x128xf32>
    %155 = vector.extract_strided_slice %153 {offsets = [0, 0], sizes = [8, 32], strides = [1, 1]} : vector<8x128xf32> to vector<8x32xf32>
    %156 = vector.extract_strided_slice %153 {offsets = [0, 32], sizes = [8, 32], strides = [1, 1]} : vector<8x128xf32> to vector<8x32xf32>
    %157 = vector.extract_strided_slice %154 {offsets = [0, 64], sizes = [8, 32], strides = [1, 1]} : vector<8x128xf32> to vector<8x32xf32>
    %158 = vector.extract_strided_slice %153 {offsets = [0, 96], sizes = [8, 32], strides = [1, 1]} : vector<8x128xf32> to vector<8x32xf32>
    %159 = arith.mulf %156, %140 : vector<8x32xf32>
    %160 = arith.mulf %155, %157 : vector<8x32xf32>
    %161 = arith.addf %159, %160 : vector<8x32xf32>
    %162 = math.tanh %161 : vector<8x32xf32>
    %163 = arith.mulf %158, %162 : vector<8x32xf32>
    %164 = tpu.concatenate %163, %40 in 1 : vector<8x32xf32>, vector<8x32xf32> -> vector<8x64xf32>
    %165 = tpu.concatenate %40, %163 in 1 : vector<8x32xf32>, vector<8x32xf32> -> vector<8x64xf32>
    %166 = arith.select %37, %164, %165 : vector<8x64xi1>, vector<8x64xf32>
    %167 = arith.truncf %166 : vector<8x64xf32> to vector<8x64xbf16>
    %cst_25 = arith.constant dense<0.000000e+00> : vector<8x128xf32>
    %168 = tpu.matmul %167, %1, %cst_25 {dimension_numbers = #tpu.dot_dimension_numbers<[1], [0], [0], [1], [0, 0, 1, 1], [], []>} : vector<8x64xbf16>, vector<64x128xbf16>, vector<8x128xf32> -> vector<8x128xf32>
    %169 = arith.addf %31, %168 : vector<8x128xf32>
    %170 = arith.negf %169 : vector<8x128xf32>
    %171 = math.exp %170 : vector<8x128xf32>
    %cst_26 = arith.constant 1.000000e+00 : f32
    %172 = vector.broadcast %cst_26 : f32 to vector<8x128xf32>
    %173 = arith.addf %172, %171 : vector<8x128xf32>
    %174 = arith.divf %172, %173 : vector<8x128xf32>
    %175 = math.tanh %169 : vector<8x128xf32>
    %176 = vector.extract_strided_slice %174 {offsets = [0, 0], sizes = [8, 32], strides = [1, 1]} : vector<8x128xf32> to vector<8x32xf32>
    %177 = vector.extract_strided_slice %174 {offsets = [0, 32], sizes = [8, 32], strides = [1, 1]} : vector<8x128xf32> to vector<8x32xf32>
    %178 = vector.extract_strided_slice %175 {offsets = [0, 64], sizes = [8, 32], strides = [1, 1]} : vector<8x128xf32> to vector<8x32xf32>
    %179 = vector.extract_strided_slice %174 {offsets = [0, 96], sizes = [8, 32], strides = [1, 1]} : vector<8x128xf32> to vector<8x32xf32>
    %180 = arith.mulf %177, %161 : vector<8x32xf32>
    %181 = arith.mulf %176, %178 : vector<8x32xf32>
    %182 = arith.addf %180, %181 : vector<8x32xf32>
    %183 = math.tanh %182 : vector<8x32xf32>
    %184 = arith.mulf %179, %183 : vector<8x32xf32>
    %185 = tpu.concatenate %184, %40 in 1 : vector<8x32xf32>, vector<8x32xf32> -> vector<8x64xf32>
    %186 = tpu.concatenate %40, %184 in 1 : vector<8x32xf32>, vector<8x32xf32> -> vector<8x64xf32>
    %187 = arith.select %37, %185, %186 : vector<8x64xi1>, vector<8x64xf32>
    %188 = arith.truncf %187 : vector<8x64xf32> to vector<8x64xbf16>
    %cst_27 = arith.constant dense<0.000000e+00> : vector<8x128xf32>
    %189 = tpu.matmul %188, %1, %cst_27 {dimension_numbers = #tpu.dot_dimension_numbers<[1], [0], [0], [1], [0, 0, 1, 1], [], []>} : vector<8x64xbf16>, vector<64x128xbf16>, vector<8x128xf32> -> vector<8x128xf32>
    %190 = arith.addf %34, %189 : vector<8x128xf32>
    %191 = arith.negf %190 : vector<8x128xf32>
    %192 = math.exp %191 : vector<8x128xf32>
    %cst_28 = arith.constant 1.000000e+00 : f32
    %193 = vector.broadcast %cst_28 : f32 to vector<8x128xf32>
    %194 = arith.addf %193, %192 : vector<8x128xf32>
    %195 = arith.divf %193, %194 : vector<8x128xf32>
    %196 = math.tanh %190 : vector<8x128xf32>
    %197 = vector.extract_strided_slice %195 {offsets = [0, 0], sizes = [8, 32], strides = [1, 1]} : vector<8x128xf32> to vector<8x32xf32>
    %198 = vector.extract_strided_slice %195 {offsets = [0, 32], sizes = [8, 32], strides = [1, 1]} : vector<8x128xf32> to vector<8x32xf32>
    %199 = vector.extract_strided_slice %196 {offsets = [0, 64], sizes = [8, 32], strides = [1, 1]} : vector<8x128xf32> to vector<8x32xf32>
    %200 = vector.extract_strided_slice %195 {offsets = [0, 96], sizes = [8, 32], strides = [1, 1]} : vector<8x128xf32> to vector<8x32xf32>
    %201 = arith.mulf %198, %182 : vector<8x32xf32>
    %202 = arith.mulf %197, %199 : vector<8x32xf32>
    %203 = arith.addf %201, %202 : vector<8x32xf32>
    %204 = math.tanh %203 : vector<8x32xf32>
    %205 = arith.mulf %200, %204 : vector<8x32xf32>
    %206 = tpu.concatenate %205, %40 in 1 : vector<8x32xf32>, vector<8x32xf32> -> vector<8x64xf32>
    %207 = tpu.concatenate %40, %205 in 1 : vector<8x32xf32>, vector<8x32xf32> -> vector<8x64xf32>
    %208 = arith.select %37, %206, %207 : vector<8x64xi1>, vector<8x64xf32>
    %209 = vector.extract_strided_slice %208 {offsets = [0, 0], sizes = [4, 64], strides = [1, 1]} : vector<8x64xf32> to vector<4x64xf32>
    %210 = vector.extract_strided_slice %208 {offsets = [4, 0], sizes = [4, 64], strides = [1, 1]} : vector<8x64xf32> to vector<4x64xf32>
    %211 = arith.addf %209, %210 : vector<4x64xf32>
    %212 = arith.truncf %211 : vector<4x64xf32> to vector<4x64xbf16>
    %cst_29 = arith.constant dense<0.000000e+00> : vector<4x64xf32>
    %213 = tpu.matmul %212, %2, %cst_29 {dimension_numbers = #tpu.dot_dimension_numbers<[1], [0], [0], [1], [0, 0, 1, 1], [], []>} : vector<4x64xbf16>, vector<64x64xbf16>, vector<4x64xf32> -> vector<4x64xf32>
    %214 = vector.broadcast %5 : vector<1x64xf32> to vector<4x64xf32>
    %215 = arith.addf %213, %214 : vector<4x64xf32>
    %cst_30 = arith.constant 0.000000e+00 : f32
    %216 = vector.broadcast %cst_30 : f32 to vector<4x64xf32>
    %217 = arith.maximumf %215, %216 : vector<4x64xf32>
    %218 = arith.truncf %217 : vector<4x64xf32> to vector<4x64xbf16>
    %cst_31 = arith.constant dense<0.000000e+00> : vector<4x128xf32>
    %219 = tpu.matmul %218, %3, %cst_31 {dimension_numbers = #tpu.dot_dimension_numbers<[1], [0], [0], [1], [0, 0, 1, 1], [], []>} : vector<4x64xbf16>, vector<64x128xbf16>, vector<4x128xf32> -> vector<4x128xf32>
    %220 = vector.broadcast %6 : vector<1x128xf32> to vector<4x128xf32>
    %221 = arith.addf %219, %220 : vector<4x128xf32>
    %cst_32 = arith.constant dense<0xFF800000> : vector<4xf32>
    %222 = vector.multi_reduction <maximumf>, %221, %cst_32 [1] : vector<4x128xf32> to vector<4xf32>
    %223 = vector.shape_cast %222 : vector<4xf32> to vector<4x1xf32>
    %224 = vector.broadcast %223 : vector<4x1xf32> to vector<4x128xf32>
    %225 = arith.subf %221, %224 : vector<4x128xf32>
    %226 = math.exp %225 : vector<4x128xf32>
    %cst_33 = arith.constant dense<0.000000e+00> : vector<4xf32>
    %227 = vector.multi_reduction <add>, %226, %cst_33 [1] : vector<4x128xf32> to vector<4xf32>
    %228 = vector.shape_cast %227 : vector<4xf32> to vector<4x1xf32>
    %229 = math.log %228 : vector<4x1xf32>
    %230 = vector.broadcast %229 : vector<4x1xf32> to vector<4x128xf32>
    %231 = arith.subf %225, %230 : vector<4x128xf32>
    %c0_34 = arith.constant 0 : index
    %c0_35 = arith.constant 0 : index
    %232 = vector.load %arg3[%c0_34, %c0_35] : memref<4x128xf32, #tpu.memory_space<vmem>>, vector<4x128xf32>
    tpu.vector_store %arg3[%c0_34, %c0_35], %231 {strides = array<i32>} : memref<4x128xf32, #tpu.memory_space<vmem>>, vector<4x128xf32>,
    return
  }
}

</mosaic_0001>

<bundles_post_ra>
// kernel: tpu_custom_call.1
= control target key start
LH: loop header
LB: loop body
LE: loop exit
PB: predicated region body
PF: predicated region fallthrough
CT: control target
= control target key end

     0   :  { %8 = vsyncpa [#allocation3], 0  ;;  %s1708_s0 = inlined_call_operand.hbm [shape: bf16[32,32], index: 0, kind: input, shape index: {}]   ;;  %s1709_s1 = inlined_call_operand.hbm [shape: bf16[224,256], index: 1, kind: input, shape index: {}]   ;;  %s1710_s2 = inlined_call_operand.hbm [shape: f32[8,256], index: 2, kind: input, shape index: {}]   ;;  %s1711_s3 = inlined_call_operand.hbm [shape: f32[4,128], index: 3, kind: output, shape index: {}]  }
   0x1   :  { %9 = vsyncpa [#allocation6], 0 }
   0x2   :  { %10 = vsyncpa [#allocation4], 0  ;;  %s1446_s12 = smov [#allocation5]  }
   0x3   :  { %s28_s13 = sshll.u32 %s1446_s12, 4  ;;  %s29_s13 = int_to_ptr.vmem [resolvable:$true] %s28_s13 }
   0x4   :  { %s1368_s14 = scalar_lea.vmem %s29_s13, 3584  ;;  %p1373_p1 = scmp.lt.s32.totalorder %s29_s13, %s29_s13 }
   0x5   :  { %p1369_p0 = scmp.ne.s32.totalorder %s29_s13, %s1368_s14  ;;  %p1374_p2 = scmp.lt.s32.totalorder %s1368_s14, %s1368_s14 }
   0x7   :  { %p1375_p3 = por %p1374_p2, %p1373_p1 }
   0x9   :  { %p1376_p4 = pnand %p1375_p3, %p1369_p0 }
   0xb   :  { %1379 = shalt.err (!%p1376_p4)
}
   0xc   :  { %s1447_s15 = smov 128   ;;  %s1448_s16 = smov 8  }
   0xd   :  { %34 = dma.hbm_to_vmem [thread:$0]  %s1709_s1, 3584, %s29_s13, [#allocation6], %s1447_s15, %s1447_s15, %s1448_s16  }
   0xe   :  { %s1449_s19 = smov [#allocation2]  }
   0xf   :  { %s16_s20 = sshll.u32 %s1449_s19, 4  ;;  %s17_s20 = int_to_ptr.vmem [resolvable:$true] %s16_s20 }
  0x10   :  { %s1388_s21 = scalar_lea.vmem %s17_s20, 256  ;;  %p1393_p6 = scmp.lt.s32.totalorder %s17_s20, %s17_s20 }
  0x11   :  { %p1389_p5 = scmp.ne.s32.totalorder %s17_s20, %s1388_s21  ;;  %p1394_p7 = scmp.lt.s32.totalorder %s1388_s21, %s1388_s21 }
  0x13   :  { %p1395_p8 = por %p1394_p7, %p1393_p6 }
  0x15   :  { %p1396_p9 = pnand %p1395_p8, %p1389_p5 }
  0x17   :  { %1399 = shalt.err (!%p1396_p9)
}
  0x18   :  { %s1450_s22 = smov 64   ;;  %s1451_s23 = smov 4  }
  0x19   :  { %22 = dma.hbm_to_vmem [thread:$0]  %s1708_s0, 256, %s17_s20, [#allocation3], %s1450_s22, %s1450_s22, %s1451_s23  }
  0x1a   :  { %s1452_s26 = smov [#allocation7]  }
  0x1b   :  { %s41_s1 = sshll.u32 %s1452_s26, 4  ;;  %s42_s1 = int_to_ptr.vmem [resolvable:$true] %s41_s1 }
  0x1c   :  { %s1408_s27 = scalar_lea.vmem %s42_s1, 256  ;;  %p1413_p11 = scmp.lt.s32.totalorder %s42_s1, %s42_s1 }
  0x1d   :  { %p1409_p10 = scmp.ne.s32.totalorder %s42_s1, %s1408_s27  ;;  %p1414_p12 = scmp.lt.s32.totalorder %s1408_s27, %s1408_s27 }
  0x1f   :  { %p1415_p13 = por %p1414_p12, %p1413_p11 }
  0x21   :  { %p1416_p0 = pnand %p1415_p13, %p1409_p10 }
  0x23   :  { %1419 = shalt.err (!%p1416_p0)
}
  0x24   :  { %44 = dma.hbm_to_vmem [thread:$0]  %s1710_s2, 256, %s42_s1, [#allocation6]  }
  0x25   :  { %1440 = dma.done.wait [#allocation3], 256  }
  0x26   :  { %1441 = vsyncadd [#allocation3], 4294967040 }
  0x27   :  { %1442 = dma.done.wait [#allocation6], 3840  }
  0x28   :  { %1443 = vsyncadd [#allocation6], 4294963456  ;;  %v1453_v0 = vmov 0.0   ;;  %v1454_v1 = vmov 0   ;;  %vm1455_vm0 = vmmov 0   ;;  %v1279_v8 = vld [vmem:[#allocation2] sm:$0xff]   ;;  %v91_v12 = vlaneseq }
  0x29   :  { %1140 = vmatprep.subr.bf16.mxu1 %v1453_v0  ;;  %170 = vmatprep.mubr.bf16.mxu0 %v1454_v1  ;;  %v1272_v2 = vld [vmem:[#allocation5 + $0x14] ss:$8 sps:$4 sm:$0xff]   ;;  %v1274_v3 = vld [vmem:[#allocation5 + $0x10] ss:$8 sps:$4 sm:$0xff]   ;;  %v1275_v4 = vld [vmem:[#allocation5 + $0x4] ss:$8 sps:$4 sm:$0xff]  }
  0x2a   :  { %1148 = vmatprep.mubr.msk.bf16.mxu1 %vm1455_vm0, %v1453_v0  ;;  %150 = vmatprep.subr.bf16.mxu0 %v1272_v2  ;;  %v1492_v5 = vld [vmem:[#allocation5 + $0x50] ss:$8 sps:$4 sm:$0xff]   ;;  %v1278_v6 = vld [vmem:[#allocation5] ss:$8 sps:$4 sm:$0xff]   ;;  %vm131_vm1 = vcmask 261120   ;;  %v1531_v13 = vshrl.u32 %v91_v12, 7 }
  0x2b   :  { %151 = vmatpush1.bf16.msra.mxu0 %v1274_v3  ;;  %1141 = vmatpush3.bf16.msra.mxu1 %v1492_v5  ;;  %v1495_v7 = vld [vmem:[#allocation5 + $0x40] ss:$8 sps:$4 sm:$0xff]   ;;  %v1500_v9 = vld [vmem:[#allocation5 + $0x30] ss:$8 sps:$4 sm:$0xff]   ;;  %vm191_vm2 = vcmask 1043456   ;;  %s1456_s0 = smov 32  }
  0x2c   :  { %152 = vmatprep.subr.bf16.mxu0 %v1275_v4  ;;  %1142 = vmatprep.subr.bf16.mxu1 %v1453_v0  ;;  %v1504_v10 = vld [vmem:[#allocation5 + $0x20] ss:$8 sps:$4 sm:$0xff]   ;;  %v1282_v11 = vld [vmem:[#allocation2 + $0x8] sm:$0xff]   ;;  %v97_v14 = vsub.s32 1, %v1531_v13  ;;  %v93_v16 = vsub.s32 0, %v1531_v13  ;;  %vm226_vm3 = vcmp.lt.s32.totalorder %v1531_v13, 4 }
  0x2d   :  { %v83_v15 = vld [vmem:[#allocation7] ss:$8 sm:$0x3]  ;;  %vm251_vm4 = vcmask 523264   ;;  %s1457_s2 = smov [#allocation8]  }
  0x2e   :  { %v98_v17 = vrot.slane %v83_v15, %v97_v14  ;;  %v94_v20 = vrot.slane %v83_v15, %v93_v16  ;;  %s1043_s30 = sshll.u32 %s1457_s2, 4  ;;  %s1044_s30 = int_to_ptr.vmem [resolvable:$true] %s1043_s30 }
  0x2f   :  { %153 = vmatpush1.bf16.msra.mxu0 %v1278_v6  ;;  %1143 = vmatpush3.bf16.msra.mxu1 %v1495_v7  ;;  %s1420_s4 = scalar_lea.vmem %s1044_s30, 64  ;;  %p1425_p2 = scmp.lt.s32.totalorder %s1044_s30, %s1044_s30 }
  0x30   :  { %1152 = vmatprep.subr.bf16.mxu0 %v1453_v0  ;;  %1144 = vmatprep.subr.bf16.mxu1 %v1453_v0  ;;  %p1421_p1 = scmp.ne.s32.totalorder %s1044_s30, %s1420_s4  ;;  %p1426_p3 = scmp.lt.s32.totalorder %s1420_s4, %s1420_s4 }
  0x32   :  { %1059 = vmatmul.mubr.msk.bf16.vlgmr.msra.gmra.mxu0 %vm131_vm1, %v1279_v8  ;;  %p1427_p4 = por %p1426_p3, %p1425_p2 }
  0x33   :  { %180 = vmatprep.mubr.bf16.mxu0 %v1454_v1  ;;  %1153 = vmatpush3.bf16.msra.mxu0 %v1492_v5 }
  0x34   :  { %1154 = vmatprep.subr.bf16.mxu0 %v1453_v0  ;;  %1145 = vmatpush3.bf16.msra.mxu1 %v1500_v9  ;;  %p1428_p5 = pnand %p1427_p4, %p1421_p1 }
  0x35   :  { %1146 = vmatprep.subr.bf16.mxu1 %v1453_v0 }
  0x37   :  { %1155 = vmatpush3.bf16.msra.mxu0 %v1495_v7 }
  0x38   :  { %1156 = vmatprep.subr.bf16.mxu0 %v1453_v0  ;;  %1147 = vmatpush3.bf16.msra.mxu1 %v1504_v10 }
  0x39   :  { %1164 = vmatprep.subr.bf16.mxu1 %v1453_v0 }
  0x3a   :  { %1060 = vmatmul.mubr.msk.bf16.gmra.mxu0 %vm131_vm1, %v1282_v11 }
  0x3b   :  { %1157 = vmatpush3.bf16.msra.mxu0 %v1500_v9  ;;  %1160 = vmatprep.mubr.msk.bf16.mxu0 %vm1455_vm0, %v1453_v0 }
  0x3c   :  { %1149 = vmatmul.mubr.bf16.vlgmr.msra.gmra.mxu1 %v1454_v1  ;;  %1158 = vmatprep.subr.bf16.mxu0 %v1453_v0 }
  0x3d   :  { %1165 = vmatpush3.bf16.msra.mxu1 %v1492_v5  ;;  %1172 = vmatprep.mubr.msk.bf16.mxu1 %vm1455_vm0, %v1453_v0 }
  0x3e   :  { %1166 = vmatprep.subr.bf16.mxu1 %v1453_v0 }
  0x3f   :  { %1159 = vmatpush3.bf16.msra.mxu0 %v1504_v10 }
  0x40   :  { %1176 = vmatprep.subr.bf16.mxu0 %v1453_v0 }
  0x41   :  { %1167 = vmatpush3.bf16.msra.mxu1 %v1495_v7 }
  0x42   :  { %1168 = vmatprep.subr.bf16.mxu1 %v1453_v0 }
  0x45   :  { %1169 = vmatpush3.bf16.msra.mxu1 %v1500_v9 }
  0x46   :  { %1170 = vmatprep.subr.bf16.mxu1 %v1453_v0 }
  0x49   :  { %1171 = vmatpush3.bf16.msra.mxu1 %v1504_v10 }
  0x4a   :  { %1188 = vmatprep.subr.bf16.mxu1 %v1453_v0 }
  0xf2   :  { %v172_v18 = vpop.f32.mrf.mxu0 }
  0xf3   :  { %v173_v34 = vadd.f32 %v172_v18, %v94_v20 }
  0xf4   :  { %v174_v19 = vpop.f32.mrf.mxu0 }
  0xf5   :  { %v175_v21 = vadd.f32 %v174_v19, %v98_v17  ;;  %v194_v50 = vrot.slane %v173_v34, 4 }
  0xf6   :  { %v176_v22 = vpop.f32.mrf.mxu0 }
  0xf7   :  { %v177_v23 = vadd.f32 %v176_v22, %v94_v20  ;;  %v221_v42 = vrot.slane %v175_v21, 4 }
  0xf8   :  { %v178_v24 = vpop.f32.mrf.mxu0 }
  0xf9   :  { %v179_v25 = vadd.f32 %v178_v24, %v98_v17  ;;  %v202_v35 = vrot.slane %v177_v23, 4 }
  0xfa   :  { %v182_v26 = vpop.f32.mrf.mxu0 }
  0xfb   :  { %v183_v27 = vadd.f32 %v182_v26, %v94_v20  ;;  %v213_v30 = vrot.slane %v179_v25, 4 }
  0xfc   :  { %v184_v28 = vpop.f32.mrf.mxu0  ;;  %v289_v29 = vpop.f32.mrf.mxu1 }
  0xfd   :  { %v210_v31 = vrot.slane %v183_v27, 4  ;;  %v185_v32 = vadd.f32 %v184_v28, %v98_v17  ;;  %v1536_v33 = vsel %vm191_vm2, %v183_v27, %v179_v25 }
  0xfe   :  { %v186_v36 = vpop.f32.mrf.mxu0  ;;  %v1150_v37 = vpop.f32.mrf.mxu1 }
  0xff   :  { %v205_v38 = vrot.slane %v185_v32, 4  ;;  %v187_v39 = vadd.f32 %v186_v36, %v94_v20  ;;  %v1539_v40 = vsel %vm191_vm2, %v177_v23, %v185_v32  ;;  %v1542_v41 = vsel %vm191_vm2, %v210_v31, %v213_v30 }
 0x100   :  { %v188_v43 = vpop.f32.mrf.mxu0  ;;  %v292_v44 = vpop.f32.mrf.mxu1 }
 0x101   :  { %v218_v45 = vrot.slane %v187_v39, 4  ;;  %v189_v46 = vadd.f32 %v188_v43, %v98_v17  ;;  %v1545_v47 = vsel %vm191_vm2, %v202_v35, %v205_v38  ;;  %v1548_v48 = vsel %vm191_vm2, %v187_v39, %v175_v21 }
 0x102   :  { %v1151_v49 = vpop.f32.mrf.mxu1 }
 0x103   :  { %v192_v51 = vsel %vm191_vm2, %v173_v34, %v189_v46  ;;  %v197_v52 = vrot.slane %v189_v46, 4  ;;  %v1552_v53 = vsel %vm191_vm2, %v218_v45, %v221_v42 }
 0x104   :  { %v295_v54 = vadd.f32 %v289_v29, %v192_v51 }
 0x105   :  { %v199_v55 = vsel %vm191_vm2, %v194_v50, %v197_v52 }
 0x106   :  { %1292 = vtanh.f32 %v295_v54  ;;  %v1065_v57 = vmul.f32 -1.442695, %v295_v54 }
 0x108   :  { %1294 = vpow2.f32 %v1065_v57 }
 0x113   :  { %v1293_v56 = vpop.eup %1292 }
 0x114   :  { %305 = vrot.lane.b32.xlu0 %v1293_v56, %s1450_s22 }
 0x115   :  { %v1295_v58 = vpop.eup %1294 }
 0x116   :  { %v299_v59 = vadd.f32 1.0, %v1295_v58 }
 0x118   :  { %1296 = vrcp.f32 %v299_v59 }
 0x125   :  { %v1297_v60 = vpop.eup %1296 }
 0x126   :  { %v303_v63 = vmul.f32 0.0, %v1297_v60 }
 0x186   :  { %v306_v61 = vpop.permute.xlu0 %305 }
 0x187   :  { %v308_v62 = vmul.f32 %v1297_v60, %v306_v61 }
 0x189   :  { %310 = vrot.lane.b32.xlu0 %v308_v62, %s1456_s0 }
 0x1fb   :  { %v311_v1 = vpop.permute.xlu0 %310 }
 0x1fc   :  { %v313_v2 = vadd.f32 %v311_v1, %v303_v63 }
 0x1fe   :  { %1298 = vtanh.f32 %v313_v2 }
 0x20b   :  { %v1299_v3 = vpop.eup %1298 }
 0x20c   :  { %316 = vrot.lane.b32.xlu1 %v1299_v3, %s1450_s22 }
 0x27e   :  { %v317_v4 = vpop.permute.xlu1 %316 }
 0x27f   :  { %v319_v6 = vmul.f32 %v1297_v60, %v317_v4 }
 0x281   :  { %325 = vrot.lane.b32.xlu0 %v319_v6, %s1450_s22  ;;  %321 = vrot.lane.b32.xlu1 %v319_v6, %s1456_s0 }
 0x2f3   :  { %v326_v8 = vpop.permute.xlu0 %325  ;;  %v322_v11 = vpop.permute.xlu1 %321 }
 0x2f4   :  { %v328_v12 = vsel %vm131_vm1, 0.0, %v326_v8  ;;  %v324_v14 = vsel %vm131_vm1, %v322_v11, 0.0 }
 0x2f5   :  { %v329_v15 = vsel %vm226_vm3, %v324_v14, %v328_v12 }
 0x2f6   :  { %v330_v16 = vpack.c.bf16 %v329_v15, %v329_v15 }
 0x2f8   :  { %1161 = vmatmul.mubr.msk.bf16.vlgmr.msra.gmra.mxu0 %vm251_vm4, %v330_v16 }
 0x2f9   :  { %1177 = vmatpush3.bf16.msra.mxu0 %v1492_v5  ;;  %1184 = vmatprep.mubr.msk.bf16.mxu0 %vm1455_vm0, %v1453_v0 }
 0x2fa   :  { %1178 = vmatprep.subr.bf16.mxu0 %v1453_v0 }
 0x2fd   :  { %1179 = vmatpush3.bf16.msra.mxu0 %v1495_v7 }
 0x2fe   :  { %1180 = vmatprep.subr.bf16.mxu0 %v1453_v0 }
 0x301   :  { %1181 = vmatpush3.bf16.msra.mxu0 %v1500_v9 }
 0x302   :  { %1182 = vmatprep.subr.bf16.mxu0 %v1453_v0 }
 0x305   :  { %1183 = vmatpush3.bf16.msra.mxu0 %v1504_v10 }
 0x306   :  { %1200 = vmatprep.subr.bf16.mxu0 %v1453_v0 }
 0x3b8   :  { %v368_v17 = vpop.f32.mrf.mxu0 }
 0x3b9   :  { %v374_v18 = vadd.f32 %v368_v17, %v199_v55 }
 0x3ba   :  { %v1162_v19 = vpop.f32.mrf.mxu0 }
 0x3bb   :  { %1300 = vtanh.f32 %v374_v18  ;;  %v1067_v23 = vmul.f32 -1.442695, %v374_v18 }
 0x3bc   :  { %v371_v20 = vpop.f32.mrf.mxu0 }
 0x3bd   :  { %1302 = vpow2.f32 %v1067_v23 }
 0x3be   :  { %v1163_v21 = vpop.f32.mrf.mxu0 }
 0x3c8   :  { %v1301_v22 = vpop.eup %1300 }
 0x3c9   :  { %384 = vrot.lane.b32.xlu1 %v1301_v22, %s1450_s22 }
 0x3ca   :  { %v1303_v24 = vpop.eup %1302 }
 0x3cb   :  { %v378_v25 = vadd.f32 1.0, %v1303_v24 }
 0x3cd   :  { %1304 = vrcp.f32 %v378_v25 }
 0x3da   :  { %v1305_v26 = vpop.eup %1304 }
 0x3db   :  { %v382_v29 = vmul.f32 %v1305_v26, %v313_v2 }
 0x43b   :  { %v385_v27 = vpop.permute.xlu1 %384 }
 0x43c   :  { %v387_v28 = vmul.f32 %v1305_v26, %v385_v27 }
 0x43e   :  { %389 = vrot.lane.b32.xlu0 %v387_v28, %s1456_s0 }
 0x4b0   :  { %v390_v30 = vpop.permute.xlu0 %389 }
 0x4b1   :  { %v392_v31 = vadd.f32 %v390_v30, %v382_v29 }
 0x4b3   :  { %1306 = vtanh.f32 %v392_v31 }
 0x4c0   :  { %v1307_v32 = vpop.eup %1306 }
 0x4c1   :  { %395 = vrot.lane.b32.xlu1 %v1307_v32, %s1450_s22 }
 0x533   :  { %v396_v34 = vpop.permute.xlu1 %395 }
 0x534   :  { %v398_v35 = vmul.f32 %v1305_v26, %v396_v34 }
 0x536   :  { %404 = vrot.lane.b32.xlu1 %v398_v35, %s1450_s22  ;;  %400 = vrot.lane.b32.xlu0 %v398_v35, %s1456_s0 }
 0x5a8   :  { %v405_v36 = vpop.permute.xlu1 %404  ;;  %v401_v37 = vpop.permute.xlu0 %400 }
 0x5a9   :  { %v407_v38 = vsel %vm131_vm1, 0.0, %v405_v36  ;;  %v403_v39 = vsel %vm131_vm1, %v401_v37, 0.0 }
 0x5aa   :  { %v408_v42 = vsel %vm226_vm3, %v403_v39, %v407_v38 }
 0x5ab   :  { %v409_v43 = vpack.c.bf16 %v408_v42, %v408_v42 }
 0x5ad   :  { %1173 = vmatmul.mubr.msk.bf16.vlgmr.msra.gmra.mxu1 %vm251_vm4, %v409_v43 }
 0x5ae   :  { %1189 = vmatpush3.bf16.msra.mxu1 %v1492_v5  ;;  %1196 = vmatprep.mubr.msk.bf16.mxu1 %vm1455_vm0, %v1453_v0 }
 0x5af   :  { %1190 = vmatprep.subr.bf16.mxu1 %v1453_v0 }
 0x5b2   :  { %1191 = vmatpush3.bf16.msra.mxu1 %v1495_v7 }
 0x5b3   :  { %1192 = vmatprep.subr.bf16.mxu1 %v1453_v0 }
 0x5b6   :  { %1193 = vmatpush3.bf16.msra.mxu1 %v1500_v9 }
 0x5b7   :  { %1194 = vmatprep.subr.bf16.mxu1 %v1453_v0 }
 0x5ba   :  { %1195 = vmatpush3.bf16.msra.mxu1 %v1504_v10 }
 0x5bb   :  { %1212 = vmatprep.subr.bf16.mxu1 %v1453_v0 }
 0x66d   :  { %v447_v44 = vpop.f32.mrf.mxu1 }
 0x66e   :  { %v453_v45 = vadd.f32 %v447_v44, %v1539_v40 }
 0x66f   :  { %v1174_v46 = vpop.f32.mrf.mxu1 }
 0x670   :  { %1308 = vtanh.f32 %v453_v45  ;;  %v1069_v52 = vmul.f32 -1.442695, %v453_v45 }
 0x671   :  { %v450_v49 = vpop.f32.mrf.mxu1 }
 0x672   :  { %1310 = vpow2.f32 %v1069_v52 }
 0x673   :  { %v1175_v50 = vpop.f32.mrf.mxu1 }
 0x67d   :  { %v1309_v51 = vpop.eup %1308 }
 0x67e   :  { %463 = vrot.lane.b32.xlu0 %v1309_v51, %s1450_s22 }
 0x67f   :  { %v1311_v54 = vpop.eup %1310 }
 0x680   :  { %v457_v55 = vadd.f32 1.0, %v1311_v54 }
 0x682   :  { %1312 = vrcp.f32 %v457_v55 }
 0x68f   :  { %v1313_v56 = vpop.eup %1312 }
 0x690   :  { %v461_v59 = vmul.f32 %v1313_v56, %v392_v31 }
 0x6f0   :  { %v464_v57 = vpop.permute.xlu0 %463 }
 0x6f1   :  { %v466_v58 = vmul.f32 %v1313_v56, %v464_v57 }
 0x6f3   :  { %468 = vrot.lane.b32.xlu1 %v466_v58, %s1456_s0 }
 0x765   :  { %v469_v60 = vpop.permute.xlu1 %468 }
 0x766   :  { %v471_v40 = vadd.f32 %v469_v60, %v461_v59 }
 0x768   :  { %1314 = vtanh.f32 %v471_v40 }
 0x775   :  { %v1315_v61 = vpop.eup %1314 }
 0x776   :  { %474 = vrot.lane.b32.xlu0 %v1315_v61, %s1450_s22 }
 0x7e8   :  { %v475_v62 = vpop.permute.xlu0 %474 }
 0x7e9   :  { %v477_v63 = vmul.f32 %v1313_v56, %v475_v62 }
 0x7eb   :  { %483 = vrot.lane.b32.xlu0 %v477_v63, %s1450_s22  ;;  %479 = vrot.lane.b32.xlu1 %v477_v63, %s1456_s0 }
 0x85d   :  { %v484_v1 = vpop.permute.xlu0 %483  ;;  %v480_v2 = vpop.permute.xlu1 %479 }
 0x85e   :  { %v486_v3 = vsel %vm131_vm1, 0.0, %v484_v1  ;;  %v482_v4 = vsel %vm131_vm1, %v480_v2, 0.0 }
 0x85f   :  { %v487_v6 = vsel %vm226_vm3, %v482_v4, %v486_v3 }
 0x860   :  { %v488_v8 = vpack.c.bf16 %v487_v6, %v487_v6 }
 0x862   :  { %1185 = vmatmul.mubr.msk.bf16.vlgmr.msra.gmra.mxu0 %vm251_vm4, %v488_v8 }
 0x863   :  { %1201 = vmatpush3.bf16.msra.mxu0 %v1492_v5  ;;  %1208 = vmatprep.mubr.msk.bf16.mxu0 %vm1455_vm0, %v1453_v0 }
 0x864   :  { %1202 = vmatprep.subr.bf16.mxu0 %v1453_v0 }
 0x867   :  { %1203 = vmatpush3.bf16.msra.mxu0 %v1495_v7 }
 0x868   :  { %1204 = vmatprep.subr.bf16.mxu0 %v1453_v0 }
 0x86b   :  { %1205 = vmatpush3.bf16.msra.mxu0 %v1500_v9 }
 0x86c   :  { %1206 = vmatprep.subr.bf16.mxu0 %v1453_v0 }
 0x86f   :  { %1207 = vmatpush3.bf16.msra.mxu0 %v1504_v10 }
 0x870   :  { %1224 = vmatprep.subr.bf16.mxu0 %v1453_v0 }
 0x922   :  { %v526_v11 = vpop.f32.mrf.mxu0 }
 0x923   :  { %v532_v12 = vadd.f32 %v526_v11, %v1545_v47 }
 0x924   :  { %v1186_v14 = vpop.f32.mrf.mxu0 }
 0x925   :  { %1316 = vtanh.f32 %v532_v12  ;;  %v1071_v18 = vmul.f32 -1.442695, %v532_v12 }
 0x926   :  { %v529_v15 = vpop.f32.mrf.mxu0 }
 0x927   :  { %1318 = vpow2.f32 %v1071_v18 }
 0x928   :  { %v1187_v16 = vpop.f32.mrf.mxu0 }
 0x932   :  { %v1317_v17 = vpop.eup %1316 }
 0x933   :  { %542 = vrot.lane.b32.xlu1 %v1317_v17, %s1450_s22 }
 0x934   :  { %v1319_v19 = vpop.eup %1318 }
 0x935   :  { %v536_v20 = vadd.f32 1.0, %v1319_v19 }
 0x937   :  { %1320 = vrcp.f32 %v536_v20 }
 0x944   :  { %v1321_v21 = vpop.eup %1320 }
 0x945   :  { %v540_v24 = vmul.f32 %v1321_v21, %v471_v40 }
 0x9a5   :  { %v543_v22 = vpop.permute.xlu1 %542 }
 0x9a6   :  { %v545_v23 = vmul.f32 %v1321_v21, %v543_v22 }
 0x9a8   :  { %547 = vrot.lane.b32.xlu0 %v545_v23, %s1456_s0 }
 0xa1a   :  { %v548_v25 = vpop.permute.xlu0 %547 }
 0xa1b   :  { %v550_v47 = vadd.f32 %v548_v25, %v540_v24 }
 0xa1d   :  { %1322 = vtanh.f32 %v550_v47 }
 0xa2a   :  { %v1323_v26 = vpop.eup %1322 }
 0xa2b   :  { %553 = vrot.lane.b32.xlu1 %v1323_v26, %s1450_s22 }
 0xa9d   :  { %v554_v27 = vpop.permute.xlu1 %553 }
 0xa9e   :  { %v556_v28 = vmul.f32 %v1321_v21, %v554_v27 }
 0xaa0   :  { %562 = vrot.lane.b32.xlu1 %v556_v28, %s1450_s22  ;;  %558 = vrot.lane.b32.xlu0 %v556_v28, %s1456_s0 }
 0xb12   :  { %v563_v29 = vpop.permute.xlu1 %562  ;;  %v559_v30 = vpop.permute.xlu0 %558 }
 0xb13   :  { %v565_v31 = vsel %vm131_vm1, 0.0, %v563_v29  ;;  %v561_v32 = vsel %vm131_vm1, %v559_v30, 0.0 }
 0xb14   :  { %v566_v34 = vsel %vm226_vm3, %v561_v32, %v565_v31 }
 0xb15   :  { %v567_v35 = vpack.c.bf16 %v566_v34, %v566_v34 }
 0xb17   :  { %1197 = vmatmul.mubr.msk.bf16.vlgmr.msra.gmra.mxu1 %vm251_vm4, %v567_v35 }
 0xb18   :  { %1213 = vmatpush3.bf16.msra.mxu1 %v1492_v5  ;;  %1220 = vmatprep.mubr.msk.bf16.mxu1 %vm1455_vm0, %v1453_v0 }
 0xb19   :  { %1214 = vmatprep.subr.bf16.mxu1 %v1453_v0 }
 0xb1c   :  { %1215 = vmatpush3.bf16.msra.mxu1 %v1495_v7 }
 0xb1d   :  { %1216 = vmatprep.subr.bf16.mxu1 %v1453_v0 }
 0xb20   :  { %1217 = vmatpush3.bf16.msra.mxu1 %v1500_v9 }
 0xb21   :  { %1218 = vmatprep.subr.bf16.mxu1 %v1453_v0 }
 0xb24   :  { %1219 = vmatpush3.bf16.msra.mxu1 %v1504_v10 }
 0xb25   :  { %1236 = vmatprep.subr.bf16.mxu1 %v1453_v0 }
 0xbd7   :  { %v605_v36 = vpop.f32.mrf.mxu1 }
 0xbd8   :  { %v611_v37 = vadd.f32 %v605_v36, %v1536_v33 }
 0xbd9   :  { %v1198_v38 = vpop.f32.mrf.mxu1 }
 0xbda   :  { %1324 = vtanh.f32 %v611_v37  ;;  %v1073_v44 = vmul.f32 -1.442695, %v611_v37 }
 0xbdb   :  { %v608_v39 = vpop.f32.mrf.mxu1 }
 0xbdc   :  { %1326 = vpow2.f32 %v1073_v44 }
 0xbdd   :  { %v1199_v42 = vpop.f32.mrf.mxu1 }
 0xbe7   :  { %v1325_v43 = vpop.eup %1324 }
 0xbe8   :  { %621 = vrot.lane.b32.xlu0 %v1325_v43, %s1450_s22 }
 0xbe9   :  { %v1327_v45 = vpop.eup %1326 }
 0xbea   :  { %v615_v46 = vadd.f32 1.0, %v1327_v45 }
 0xbec   :  { %1328 = vrcp.f32 %v615_v46 }
 0xbf9   :  { %v1329_v49 = vpop.eup %1328 }
 0xbfa   :  { %v619_v52 = vmul.f32 %v1329_v49, %v550_v47 }
 0xc5a   :  { %v622_v50 = vpop.permute.xlu0 %621 }
 0xc5b   :  { %v624_v51 = vmul.f32 %v1329_v49, %v622_v50 }
 0xc5d   :  { %626 = vrot.lane.b32.xlu1 %v624_v51, %s1456_s0 }
 0xccf   :  { %v627_v54 = vpop.permute.xlu1 %626 }
 0xcd0   :  { %v629_v33 = vadd.f32 %v627_v54, %v619_v52 }
 0xcd2   :  { %1330 = vtanh.f32 %v629_v33 }
 0xcdf   :  { %v1331_v55 = vpop.eup %1330 }
 0xce0   :  { %632 = vrot.lane.b32.xlu0 %v1331_v55, %s1450_s22 }
 0xd52   :  { %v633_v56 = vpop.permute.xlu0 %632 }
 0xd53   :  { %v635_v57 = vmul.f32 %v1329_v49, %v633_v56 }
 0xd55   :  { %641 = vrot.lane.b32.xlu0 %v635_v57, %s1450_s22  ;;  %637 = vrot.lane.b32.xlu1 %v635_v57, %s1456_s0 }
 0xdc7   :  { %v642_v58 = vpop.permute.xlu0 %641  ;;  %v638_v59 = vpop.permute.xlu1 %637 }
 0xdc8   :  { %v644_v60 = vsel %vm131_vm1, 0.0, %v642_v58  ;;  %v640_v40 = vsel %vm131_vm1, %v638_v59, 0.0 }
 0xdc9   :  { %v645_v61 = vsel %vm226_vm3, %v640_v40, %v644_v60 }
 0xdca   :  { %v646_v62 = vpack.c.bf16 %v645_v61, %v645_v61 }
 0xdcc   :  { %1209 = vmatmul.mubr.msk.bf16.vlgmr.msra.gmra.mxu0 %vm251_vm4, %v646_v62 }
 0xdcd   :  { %1225 = vmatpush3.bf16.msra.mxu0 %v1492_v5  ;;  %1232 = vmatprep.mubr.msk.bf16.mxu0 %vm1455_vm0, %v1453_v0 }
 0xdce   :  { %1226 = vmatprep.subr.bf16.mxu0 %v1453_v0 }
 0xdd1   :  { %1227 = vmatpush3.bf16.msra.mxu0 %v1495_v7 }
 0xdd2   :  { %1228 = vmatprep.subr.bf16.mxu0 %v1453_v0 }
 0xdd5   :  { %1229 = vmatpush3.bf16.msra.mxu0 %v1500_v9 }
 0xdd6   :  { %1230 = vmatprep.subr.bf16.mxu0 %v1453_v0 }
 0xdd9   :  { %1231 = vmatpush3.bf16.msra.mxu0 %v1504_v10 }
 0xdda   :  { %1248 = vmatprep.subr.bf16.mxu0 %v1453_v0 }
 0xe8c   :  { %v684_v63 = vpop.f32.mrf.mxu0 }
 0xe8d   :  { %v690_v5 = vadd.f32 %v684_v63, %v1542_v41 }
 0xe8e   :  { %v1210_v1 = vpop.f32.mrf.mxu0 }
 0xe8f   :  { %1332 = vtanh.f32 %v690_v5  ;;  %v1075_v7 = vmul.f32 -1.442695, %v690_v5  ;;  %v1284_v5 = vld [vmem:[#allocation5 + $0x90] ss:$8 sps:$4 sm:$0xff]   ;;  %v1285_v1 = vld [vmem:[#allocation5 + $0x80] ss:$8 sps:$4 sm:$0xff]  }
 0xe90   :  { %v687_v2 = vpop.f32.mrf.mxu0 }
 0xe91   :  { %1334 = vpow2.f32 %v1075_v7  ;;  %v1288_v7 = vld [vmem:[#allocation5 + $0xd0] ss:$8 sps:$4 sm:$0xff]  }
 0xe92   :  { %v1211_v3 = vpop.f32.mrf.mxu0 }
 0xe93   :  { %v1286_v3 = vld [vmem:[#allocation5 + $0x70] ss:$8 sps:$4 sm:$0xff]  }
 0xe9c   :  { %v1333_v4 = vpop.eup %1332 }
 0xe9d   :  { %700 = vrot.lane.b32.xlu1 %v1333_v4, %s1450_s22  ;;  %v1287_v4 = vld [vmem:[#allocation5 + $0x60] ss:$8 sps:$4 sm:$0xff]  }
 0xe9e   :  { %v1335_v6 = vpop.eup %1334 }
 0xe9f   :  { %v694_v9 = vadd.f32 1.0, %v1335_v6 }
 0xea1   :  { %1336 = vrcp.f32 %v694_v9  ;;  %v1289_v9 = vld [vmem:[#allocation5 + $0xc0] ss:$8 sps:$4 sm:$0xff]  }
 0xeae   :  { %v1337_v8 = vpop.eup %1336 }
 0xeaf   :  { %v698_v12 = vmul.f32 %v1337_v8, %v629_v33 }
 0xf0f   :  { %v701_v11 = vpop.permute.xlu1 %700 }
 0xf10   :  { %v703_v10 = vmul.f32 %v1337_v8, %v701_v11 }
 0xf12   :  { %705 = vrot.lane.b32.xlu0 %v703_v10, %s1456_s0 }
 0xf84   :  { %v706_v14 = vpop.permute.xlu0 %705 }
 0xf85   :  { %v708_v41 = vadd.f32 %v706_v14, %v698_v12 }
 0xf87   :  { %1338 = vtanh.f32 %v708_v41 }
 0xf94   :  { %v1339_v15 = vpop.eup %1338 }
 0xf95   :  { %711 = vrot.lane.b32.xlu1 %v1339_v15, %s1450_s22 }
0x1007   :  { %v712_v16 = vpop.permute.xlu1 %711 }
0x1008   :  { %v714_v17 = vmul.f32 %v1337_v8, %v712_v16 }
0x100a   :  { %720 = vrot.lane.b32.xlu1 %v714_v17, %s1450_s22  ;;  %716 = vrot.lane.b32.xlu0 %v714_v17, %s1456_s0 }
0x107c   :  { %v721_v18 = vpop.permute.xlu1 %720  ;;  %v717_v19 = vpop.permute.xlu0 %716 }
0x107d   :  { %v723_v20 = vsel %vm131_vm1, 0.0, %v721_v18  ;;  %v719_v21 = vsel %vm131_vm1, %v717_v19, 0.0  ;;  %v1290_v18 = vld [vmem:[#allocation5 + $0xb0] ss:$8 sps:$4 sm:$0xff]   ;;  %v1291_v19 = vld [vmem:[#allocation5 + $0xa0] ss:$8 sps:$4 sm:$0xff]  }
0x107e   :  { %v724_v22 = vsel %vm226_vm3, %v719_v21, %v723_v20  ;;  %v84_v20 = vld [vmem:[#allocation7 + $0x1] ss:$0 sm:$0xff] }
0x107f   :  { %v725_v23 = vpack.c.bf16 %v724_v22, %v724_v22 }
0x1081   :  { %1221 = vmatmul.mubr.msk.bf16.vlgmr.msra.gmra.mxu1 %vm251_vm4, %v725_v23 }
0x1082   :  { %1244 = vmatprep.mubr.msk.bf16.mxu1 %vm1455_vm0, %v1453_v0  ;;  %1237 = vmatpush3.bf16.msra.mxu1 %v1284_v5 }
0x1083   :  { %1238 = vmatprep.subr.bf16.mxu1 %v1453_v0 }
0x1086   :  { %1239 = vmatpush3.bf16.msra.mxu1 %v1285_v1 }
0x1087   :  { %1240 = vmatprep.subr.bf16.mxu1 %v1453_v0 }
0x108a   :  { %1241 = vmatpush3.bf16.msra.mxu1 %v1286_v3 }
0x108b   :  { %1242 = vmatprep.subr.bf16.mxu1 %v1453_v0 }
0x108e   :  { %1243 = vmatpush3.bf16.msra.mxu1 %v1287_v4 }
0x1141   :  { %v763_v24 = vpop.f32.mrf.mxu1 }
0x1142   :  { %v769_v25 = vadd.f32 %v763_v24, %v1548_v48 }
0x1143   :  { %v1222_v47 = vpop.f32.mrf.mxu1 }
0x1144   :  { %1340 = vtanh.f32 %v769_v25  ;;  %v1077_v29 = vmul.f32 -1.442695, %v769_v25 }
0x1145   :  { %v766_v26 = vpop.f32.mrf.mxu1 }
0x1146   :  { %1342 = vpow2.f32 %v1077_v29  ;;  %v85_v26 = vld [vmem:[#allocation7 + $0x2] ss:$0 sm:$0xff] }
0x1147   :  { %v1223_v27 = vpop.f32.mrf.mxu1 }
0x1151   :  { %v1341_v28 = vpop.eup %1340 }
0x1152   :  { %779 = vrot.lane.b32.xlu0 %v1341_v28, %s1450_s22 }
0x1153   :  { %v1343_v30 = vpop.eup %1342 }
0x1154   :  { %v773_v31 = vadd.f32 1.0, %v1343_v30 }
0x1156   :  { %1344 = vrcp.f32 %v773_v31 }
0x1163   :  { %v1345_v32 = vpop.eup %1344 }
0x1164   :  { %v777_v36 = vmul.f32 %v1345_v32, %v708_v41 }
0x11c4   :  { %v780_v34 = vpop.permute.xlu0 %779 }
0x11c5   :  { %v782_v35 = vmul.f32 %v1345_v32, %v780_v34 }
0x11c7   :  { %784 = vrot.lane.b32.xlu1 %v782_v35, %s1456_s0 }
0x1239   :  { %v785_v37 = vpop.permute.xlu1 %784 }
0x123a   :  { %v787_v48 = vadd.f32 %v785_v37, %v777_v36 }
0x123c   :  { %1346 = vtanh.f32 %v787_v48 }
0x1249   :  { %v1347_v38 = vpop.eup %1346 }
0x124a   :  { %790 = vrot.lane.b32.xlu0 %v1347_v38, %s1450_s22 }
0x12bc   :  { %v791_v39 = vpop.permute.xlu0 %790 }
0x12bd   :  { %v793_v42 = vmul.f32 %v1345_v32, %v791_v39 }
0x12bf   :  { %799 = vrot.lane.b32.xlu0 %v793_v42, %s1450_s22  ;;  %795 = vrot.lane.b32.xlu1 %v793_v42, %s1456_s0 }
0x1331   :  { %v800_v43 = vpop.permute.xlu0 %799  ;;  %v796_v44 = vpop.permute.xlu1 %795 }
0x1332   :  { %v802_v45 = vsel %vm131_vm1, 0.0, %v800_v43  ;;  %v798_v46 = vsel %vm131_vm1, %v796_v44, 0.0 }
0x1333   :  { %v803_v49 = vsel %vm226_vm3, %v798_v46, %v802_v45 }
0x1334   :  { %v804_v50 = vpack.c.bf16 %v803_v49, %v803_v49 }
0x1336   :  { %1233 = vmatmul.mubr.msk.bf16.vlgmr.msra.gmra.mxu0 %vm251_vm4, %v804_v50 }
0x1337   :  { %1256 = vmatprep.mubr.msk.bf16.mxu0 %vm1455_vm0, %v1453_v0  ;;  %1249 = vmatpush3.bf16.msra.mxu0 %v1288_v7 }
0x1338   :  { %1250 = vmatprep.subr.bf16.mxu0 %v1453_v0 }
0x133b   :  { %1251 = vmatpush3.bf16.msra.mxu0 %v1289_v9 }
0x133c   :  { %1252 = vmatprep.subr.bf16.mxu0 %v1453_v0 }
0x133f   :  { %1253 = vmatpush3.bf16.msra.mxu0 %v1290_v18 }
0x1340   :  { %1254 = vmatprep.subr.bf16.mxu0 %v1453_v0 }
0x1343   :  { %1255 = vmatpush3.bf16.msra.mxu0 %v1291_v19 }
0x13f6   :  { %v842_v51 = vpop.f32.mrf.mxu0 }
0x13f7   :  { %v848_v52 = vadd.f32 %v842_v51, %v1552_v53 }
0x13f8   :  { %v1234_v54 = vpop.f32.mrf.mxu0 }
0x13f9   :  { %1348 = vtanh.f32 %v848_v52  ;;  %v1079_v57 = vmul.f32 -1.442695, %v848_v52 }
0x13fa   :  { %v845_v33 = vpop.f32.mrf.mxu0 }
0x13fb   :  { %1350 = vpow2.f32 %v1079_v57 }
0x13fc   :  { %v1235_v55 = vpop.f32.mrf.mxu0 }
0x1406   :  { %v1349_v56 = vpop.eup %1348 }
0x1407   :  { %858 = vrot.lane.b32.xlu1 %v1349_v56, %s1450_s22 }
0x1408   :  { %v1351_v58 = vpop.eup %1350 }
0x1409   :  { %v852_v59 = vadd.f32 1.0, %v1351_v58 }
0x140b   :  { %1352 = vrcp.f32 %v852_v59 }
0x1418   :  { %v1353_v60 = vpop.eup %1352 }
0x1419   :  { %v856_v62 = vmul.f32 %v1353_v60, %v787_v48 }
0x1479   :  { %v859_v40 = vpop.permute.xlu1 %858 }
0x147a   :  { %v861_v61 = vmul.f32 %v1353_v60, %v859_v40 }
0x147c   :  { %863 = vrot.lane.b32.xlu0 %v861_v61, %s1456_s0 }
0x14ee   :  { %v864_v63 = vpop.permute.xlu0 %863 }
0x14ef   :  { %v866_v53 = vadd.f32 %v864_v63, %v856_v62 }
0x14f1   :  { %1354 = vtanh.f32 %v866_v53 }
0x14fe   :  { %v1355_v2 = vpop.eup %1354 }
0x14ff   :  { %869 = vrot.lane.b32.xlu1 %v1355_v2, %s1450_s22 }
0x1571   :  { %v870_v6 = vpop.permute.xlu1 %869 }
0x1572   :  { %v872_v8 = vmul.f32 %v1353_v60, %v870_v6 }
0x1574   :  { %878 = vrot.lane.b32.xlu1 %v872_v8, %s1450_s22  ;;  %874 = vrot.lane.b32.xlu0 %v872_v8, %s1456_s0 }
0x15e6   :  { %v879_v11 = vpop.permute.xlu1 %878  ;;  %v875_v10 = vpop.permute.xlu0 %874 }
0x15e7   :  { %v881_v12 = vsel %vm131_vm1, 0.0, %v879_v11  ;;  %v877_v14 = vsel %vm131_vm1, %v875_v10, 0.0 }
0x15e8   :  { %v882_v41 = vsel %vm226_vm3, %v877_v14, %v881_v12 }
0x15e9   :  { %v884_v15 = vrot.slane %v882_v41, 4 }
0x15eb   :  { %v886_v16 = vadd.f32 %v884_v15, %v882_v41 }
0x15ed   :  { %v887_v17 = vpack.c.bf16 %v886_v16, %v886_v16 }
0x15ef   :  { %1245 = vmatmul.mubr.msk.bf16.vlgmr.msra.gmra.mxu1 %vm251_vm4, %v887_v17 }
0x16af   :  { %v949_v21 = vpop.f32.mrf.mxu1 }
0x16b0   :  { %v950_v22 = vadd.f32 %v949_v21, %v84_v20 }
0x16b1   :  { %v1246_v23 = vpop.f32.mrf.mxu1 }
0x16b2   :  { %v955_v24 = vmax.f32 %v950_v22, 0.0 }
0x16b3   :  { %v952_v25 = vpop.f32.mrf.mxu1 }
0x16b4   :  { %v956_v47 = vpack.c.bf16 %v955_v24, %v955_v24 }
0x16b5   :  { %v1247_v13 = vpop.f32.mrf.mxu1 }
0x16b6   :  { %1257 = vmatmul.mubr.msk.bf16.vlgmr.msra.gmra.mxu0 %vm251_vm4, %v956_v47 }
0x1776   :  { %v1018_v27 = vpop.f32.mrf.mxu0 }
0x1777   :  { %v1019_v28 = vadd.f32 %v1018_v27, %v85_v26 }
0x1778   :  { %v1258_v29 = vpop.f32.mrf.mxu0 }
0x1779   :  { %v1024_v30 = vsel %vm191_vm2, %v1019_v28, -inf }
0x177a   :  { %1025 = vmax.xlane.f32.xlu0 %v1024_v30  ;;  %v1021_v0 = vpop.f32.mrf.mxu0 }
0x177c   :  { %v1259_v31 = vpop.f32.mrf.mxu0 }
0x1803   :  { %v1026_v32 = vpop.xlane.xlu0 %1025 }
0x1804   :  { %v1027_v34 = vsub.f32 %v1019_v28, %v1026_v32 }
0x1806   :  { %v1028_v35 = vmul.f32 1.442695, %v1027_v34 }
0x1808   :  { %1356 = vpow2.f32 %v1028_v35 }
0x1815   :  { %v1357_v36 = vpop.eup %1356 }
0x1816   :  { %v1030_v37 = vsel %vm191_vm2, %v1357_v36, 0.0 }
0x1817   :  { %1031 = vadd.xlane.f32.xlu1 %v1030_v37 }
0x18a0   :  { %v1032_v48 = vpop.xlane.xlu1 %1031 }
0x18a1   :  { %1358 = vlog2.f32 %v1032_v48 }
0x18ae   :  { %v1359_v38 = vpop.eup %1358 }
0x18af   :  { %v1034_v39 = vmul.f32 0.6931472, %v1359_v38 }
0x18b1   :  { %v1035_v42 = vsub.f32 %v1027_v34, %v1034_v39 }
0x18b3   :  { %1036 = vst [vmem:[#allocation8] sm:$0xf] %v1035_v42 }
0x18b4   :  { %1431 = shalt.err (!%p1428_p5)
}
0x18b5   :  { %1046 = dma.vmem_to_hbm [thread:$0]  %s1044_s30, 64, %s1711_s3, [#allocation4]  }
0x18b6   :  { %1444 = dma.done.wait [#allocation4], 64  }
0x18b7   :  { %1445 = vsyncadd [#allocation4], 4294967232 }
0x18b8   :  { %1050 = vsyncpa [#allocation3], 1 }
0x18b9   :  { %1051 = vsyncpa [#allocation6], 1 }
0x18ba   :  { %1052 = vsyncpa [#allocation4], 1 }

</bundles_post_ra>
